<compile_context>
chip_gen: v7x
topology: tpu7x:2x2x1
jax: 0.10.0
libtpu: 0.0.40
codegen_flags: <defaults>
</compile_context>

<pallas_src>
import logging

import jax
import jax.numpy as jnp
from jax.experimental import pallas as pl
from jax.experimental.pallas import tpu as pltpu


def _round_up(x: int, m: int) -> int:
    return ((x + m - 1) // m) * m


# ----------------------------------------------------------------------------
# Kernels
# ----------------------------------------------------------------------------
def _rep_head_fullk_kernel(x_ref, w_ref, o_ref):
    """1-D grid over batch tiles; full-K dot per step, cast x to bf16 on-chip."""
    o_ref[...] = jnp.dot(
        x_ref[...].astype(jnp.bfloat16),
        w_ref[...],
        preferred_element_type=jnp.float32,
    )


def _rep_head_kgrid_kernel(x_ref, w_ref, o_ref, acc_ref):
    """Fallback: tiled K reduction (reduction axis is the LAST grid axis)."""
    kk = pl.program_id(1)

    @pl.when(kk == 0)
    def _():
        acc_ref[...] = jnp.zeros_like(acc_ref)

    acc_ref[...] += jnp.dot(
        x_ref[...].astype(jnp.bfloat16),
        w_ref[...],
        preferred_element_type=jnp.float32,
    )

    @pl.when(kk == pl.num_programs(1) - 1)
    def _():
        o_ref[...] = acc_ref[...]


# ----------------------------------------------------------------------------
# Module
# ----------------------------------------------------------------------------
class BaseNetPallas:
    """Pallas/JAX analogue of Deep-SVDD BaseNet (with minimal concrete forward)."""

    # Conservative per-call VMEM budget (bytes) for the full-K path: fits the
    # smallest scoped default across generations (v5e 16 MiB) with headroom,
    # and is far below v7x's 64 MiB physical VMEM.
    _VMEM_BUDGET = 12 * 1024 * 1024

    def __init__(self, in_features: int, rep_dim: int = 32, seed: int = 0):
        self.logger = logging.getLogger(self.__class__.__name__)
        self.rep_dim = rep_dim
        self.in_features = in_features
        self._n_pad = _round_up(max(rep_dim, 128), 128)  # lane-dense N (=128)

        # Deterministic parameter init (synthetic; no checkpoint load).
        key = jax.random.PRNGKey(seed)
        scale = 1.0 / jnp.sqrt(jnp.float32(in_features))
        w = jax.random.normal(key, (in_features, rep_dim), dtype=jnp.float32) * scale
        # Zero-pad rep_dim -> 128 lanes; keep K unpadded (full-K blocks are
        # legal regardless of K % 128).  Store as bf16 (MXU operand).
        w = jnp.pad(w, ((0, 0), (0, self._n_pad - rep_dim)))
        self.weight = w.astype(jnp.bfloat16)

    # --- tiling helpers -----------------------------------------------------
    def _fullk_vmem_bytes(self, tm: int) -> int:
        k, n = self.in_features, self._n_pad
        # x: f32, double-buffered; w: bf16, double-buffered (resident after the
        # first fetch since its block index never changes); out: f32, 2 bufs.
        return 2 * tm * k * 4 + 2 * k * n * 2 + 2 * tm * n * 4

    def _pick_tm(self, b: int) -> int:
        # Target tile: 256 for large batches (fills 2x256 MXU M dim on
        # v6e/v7x), else 128 (matches v5e's 4x128 MXU).
        tm_target = 256 if b >= 512 else 128
        # Guarantee >=2 batch tiles whenever the batch allows so both v7x
        # TensorCores get work (no-op on v5e/v6e).
        tm = min(tm_target, _round_up(max(pl.cdiv(b, 2), 1), 8))
        tm = max(tm, 8)  # f32 sublane minimum
        # Shrink (halve) until the full-K footprint fits the VMEM budget.
        while tm > 8 and self._fullk_vmem_bytes(tm) > self._VMEM_BUDGET:
            tm = max(8, _round_up(tm // 2, 8))
        return tm

    # --- forward ------------------------------------------------------------
    def forward(self, x_nchw: jnp.ndarray) -> jnp.ndarray:
        b = x_nchw.shape[0]
        # Flatten NCHW -> [B, C*H*W]; stay in f32 (cast to bf16 happens
        # on-chip inside the kernel — saves a full extra HBM pass over x).
        x_flat = x_nchw.reshape(b, -1).astype(jnp.float32)
        k = x_flat.shape[1]
        assert k == self.in_features, (k, self.in_features)
        n_pad = self._n_pad

        tm = self._pick_tm(b)
        b_pad = _round_up(b, tm)
        if b_pad != b:
            # Only the (cheap) batch-row pad; no K pad, no dtype copy.
            x_flat = jnp.pad(x_flat, ((0, b_pad - b), (0, 0)))

        if self._fullk_vmem_bytes(tm) <= self._VMEM_BUDGET:
            # -------- primary path: 1-D batch grid, full-K blocks ----------
            grid = (b_pad // tm,)
            cost = pl.CostEstimate(
                flops=2 * b_pad * k * n_pad,          # actual padded MXU work
                transcendentals=0,
                bytes_accessed=(b_pad * k * 4          # x read (f32)
                                + k * n_pad * 2        # weight read once
                                + b_pad * n_pad * 4),  # output write (f32)
            )
            out_padded = pl.pallas_call(
                _rep_head_fullk_kernel,
                out_shape=jax.ShapeDtypeStruct((b_pad, n_pad), jnp.float32),
                grid_spec=pltpu.PrefetchScalarGridSpec(
                    num_scalar_prefetch=0,
                    grid=grid,
                    in_specs=[
                        pl.BlockSpec((tm, k), lambda i: (i, 0)),
                        pl.BlockSpec((k, n_pad), lambda i: (0, 0)),  # resident
                    ],
                    out_specs=pl.BlockSpec((tm, n_pad), lambda i: (i, 0)),
                ),
                compiler_params=pltpu.CompilerParams(
                    dimension_semantics=("parallel",),
                ),
                cost_estimate=cost,
            )(x_flat, self.weight)
        else:
            # -------- fallback: huge K -> tiled reduction (axis last) ------
            tk = 2048
            k_pad = _round_up(k, tk)
            x_pad = jnp.pad(x_flat, ((0, 0), (0, k_pad - k)))
            w_pad = jnp.pad(self.weight, ((0, k_pad - k), (0, 0)))
            grid = (b_pad // tm, k_pad // tk)
            cost = pl.CostEstimate(
                flops=2 * b_pad * k_pad * n_pad,
                transcendentals=0,
                bytes_accessed=(b_pad * k_pad * 4
                                + (b_pad // tm) * k_pad * n_pad * 2
                                + b_pad * n_pad * 4),
            )
            out_padded = pl.pallas_call(
                _rep_head_kgrid_kernel,
                out_shape=jax.ShapeDtypeStruct((b_pad, n_pad), jnp.float32),
                grid_spec=pltpu.PrefetchScalarGridSpec(
                    num_scalar_prefetch=0,
                    grid=grid,
                    in_specs=[
                        pl.BlockSpec((tm, tk), lambda i, kk: (i, kk)),
                        pl.BlockSpec((tk, n_pad), lambda i, kk: (kk, 0)),
                    ],
                    out_specs=pl.BlockSpec((tm, n_pad), lambda i, kk: (i, 0)),
                    scratch_shapes=[pltpu.VMEM((tm, n_pad), jnp.float32)],
                ),
                compiler_params=pltpu.CompilerParams(
                    dimension_semantics=("parallel", "arbitrary"),
                ),
                cost_estimate=cost,
            )(x_pad, w_pad)

        # Strip batch / rep_dim padding outside the kernel.
        return out_padded[:b, : self.rep_dim]

    def summary(self):
        """Network summary (parameter count), mirroring BaseNet.summary."""
        params = int(self.in_features * self.rep_dim)
        self.logger.debug("Trainable parameters: {}".format(params))
        self.logger.info(self)
        return params

    # TODO(synk): the original BaseNet.forward raises NotImplementedError; the
    # linear rep-head above is the minimal concrete instantiation of the
    # abstract contract (NCHW batch -> rep_dim embedding).


if __name__ == "__main__":
    # Small shapes consistent with an NCHW Deep-SVDD input.
    B, C, H, W = 2, 4, 16, 16
    key = jax.random.PRNGKey(0)
    x = jax.random.normal(key, (B, C, H, W), dtype=jnp.float32)

    net = BaseNetPallas(in_features=C * H * W, rep_dim=32, seed=0)
    net.summary()

    out = net.forward(x)
    out = jax.block_until_ready(out)

    assert out.shape == (B, 32), out.shape
    assert out.dtype == jnp.float32, out.dtype

    # Numerical sanity check against a plain-JAX reference (bf16 operands,
    # f32 accumulation — allow bf16-level tolerance).
    ref = jnp.dot(
        x.reshape(B, -1).astype(jnp.bfloat16),
        net.weight[:, :32],
        preferred_element_type=jnp.float32,
    )
    assert jnp.allclose(out, ref, atol=1e-2, rtol=1e-2), "mismatch vs reference"

    print("KERNEL_OK")
</pallas_src>

<mosaic_0001>
module attributes {stable_mosaic.version = 11 : i64} {
  func.func @_rep_head_fullk_kernel(%arg0: i32, %arg1: memref<8x1024xf32, #tpu.memory_space<vmem>>, %arg2: memref<1024x128xbf16, #tpu.memory_space<vmem>>, %arg3: memref<8x128xf32, #tpu.memory_space<vmem>>) attributes {dimension_semantics = [#tpu.dimension_semantics<parallel>], iteration_bounds = array<i64: 1>, scalar_prefetch = 0 : i64, scratch_operands = 0 : i64, tpu.core_type = #tpu.core_type<tc>, window_params = [{transform_indices = @transform_0, window_bounds = array<i64: 8, 1024>}, {pipeline_mode = #tpu.pipeline_mode<synchronous>, transform_indices = @transform_1, window_bounds = array<i64: 1024, 128>}, {transform_indices = @transform_2, window_bounds = array<i64: 8, 128>}]} {
    %c0 = arith.constant 0 : index
    %c0_0 = arith.constant 0 : index
    %0 = vector.load %arg1[%c0, %c0_0] : memref<8x1024xf32, #tpu.memory_space<vmem>>, vector<8x1024xf32>
    %1 = arith.truncf %0 : vector<8x1024xf32> to vector<8x1024xbf16>
    %c0_1 = arith.constant 0 : index
    %c0_2 = arith.constant 0 : index
    %2 = vector.load %arg2[%c0_1, %c0_2] : memref<1024x128xbf16, #tpu.memory_space<vmem>>, vector<1024x128xbf16>
    %cst = arith.constant dense<0.000000e+00> : vector<8x128xf32>
    %3 = tpu.matmul %1, %2, %cst {dimension_numbers = #tpu.dot_dimension_numbers<[1], [0], [0], [1], [0, 0, 1, 1], [], []>} : vector<8x1024xbf16>, vector<1024x128xbf16>, vector<8x128xf32> -> vector<8x128xf32>
    %c0_3 = arith.constant 0 : index
    %c0_4 = arith.constant 0 : index
    %4 = vector.load %arg3[%c0_3, %c0_4] : memref<8x128xf32, #tpu.memory_space<vmem>>, vector<8x128xf32>
    tpu.vector_store %arg3[%c0_3, %c0_4], %3 {strides = array<i32>} : memref<8x128xf32, #tpu.memory_space<vmem>>, vector<8x128xf32>,
    return
  }
  func.func @transform_0(%arg0: i32) -> (i32, i32) {
    %c0_i32 = arith.constant 0 : i32
    %c0_i32_0 = arith.constant 0 : i32
    return %arg0, %c0_i32 : i32, i32
  }
  func.func @transform_1(%arg0: i32) -> (i32, i32) {
    %c0_i32 = arith.constant 0 : i32
    %c0_i32_0 = arith.constant 0 : i32
    %c0_i32_1 = arith.constant 0 : i32
    return %c0_i32, %c0_i32_0 : i32, i32
  }
  func.func @transform_2(%arg0: i32) -> (i32, i32) {
    %c0_i32 = arith.constant 0 : i32
    %c0_i32_0 = arith.constant 0 : i32
    return %arg0, %c0_i32 : i32, i32
  }
}

</mosaic_0001>

<bundles_post_ra>
// kernel: tpu_custom_call.1
= control target key start
LH: loop header
LB: loop body
LE: loop exit
PB: predicated region body
PF: predicated region fallthrough
CT: control target
= control target key end

     0   :  { %7 = vsyncpa [#allocation3], 0  ;;  %s1100_s0 = inlined_call_operand.hbm [shape: f32[8,1024], index: 0, kind: input, shape index: {}]   ;;  %s1101_s1 = inlined_call_operand.hbm [shape: bf16[1024,128], index: 1, kind: input, shape index: {}]   ;;  %s1102_s2 = inlined_call_operand.hbm [shape: f32[8,128], index: 2, kind: output, shape index: {}]  }
   0x1   :  { %8 = vsyncpa [#allocation6], 0 }
   0x2   :  { %9 = vsyncpa [#allocation4], 0  ;;  %s1037_s9 = smov [#allocation2]   ;;  %s1038_s11 = smov [#allocation5]  }
   0x3   :  { %s16_s10 = sshll.u32 %s1037_s9, 4  ;;  %s25_s12 = sshll.u32 %s1038_s11, 4  ;;  %s17_s10 = int_to_ptr.vmem [resolvable:$true] %s16_s10  ;;  %s1057_s12 = int_to_ptr.vmem [resolvable:$true] %s25_s12 }
   0x4   :  { %s965_s15 = scalar_lea.hbm %s1100_s0, 1024 }
   0x5   :  { %p966_p0 = scmp.ne.s32.totalorder %s1100_s0, %s965_s15  ;;  %p969_p1 = scmp.lt.u32.totalorder %s965_s15, %s1100_s0 }
   0x7   :  { %p971_p2 = pnand %p969_p1, %p966_p0 }
   0x9   :  { %974 = shalt.err (!%p971_p2)
}
   0xa   :  { %s975_s20 = scalar_lea.vmem %s17_s10, 1024  ;;  %p980_p4 = scmp.lt.s32.totalorder %s17_s10, %s17_s10 }
   0xb   :  { %p976_p3 = scmp.ne.s32.totalorder %s17_s10, %s975_s20  ;;  %p981_p5 = scmp.lt.s32.totalorder %s975_s20, %s975_s20 }
   0xd   :  { %p982_p6 = por %p981_p5, %p980_p4 }
   0xf   :  { %p983_p7 = pnand %p982_p6, %p976_p3 }
  0x11   :  { %986 = shalt.err (!%p983_p7)
}
  0x12   :  { %19 = dma.hbm_to_vmem [thread:$0]  %s1100_s0, 1024, %s17_s10, [#allocation3]  }
  0x13   :  { %s987_s25 = scalar_lea.hbm %s1101_s1, 8192 }
  0x14   :  { %p988_p8 = scmp.ne.s32.totalorder %s1101_s1, %s987_s25  ;;  %p991_p9 = scmp.lt.u32.totalorder %s987_s25, %s1101_s1 }
  0x16   :  { %p993_p10 = pnand %p991_p9, %p988_p8 }
  0x18   :  { %996 = shalt.err (!%p993_p10)
}
  0x19   :  { %s997_s30 = scalar_lea.vmem %s1057_s12, 8192  ;;  %p1002_p12 = scmp.lt.s32.totalorder %s1057_s12, %s1057_s12 }
  0x1a   :  { %p998_p11 = scmp.ne.s32.totalorder %s1057_s12, %s997_s30  ;;  %p1003_p13 = scmp.lt.s32.totalorder %s997_s30, %s997_s30 }
  0x1c   :  { %p1004_p0 = por %p1003_p13, %p1002_p12 }
  0x1e   :  { %p1005_p1 = pnand %p1004_p0, %p998_p11 }
  0x20   :  { %1008 = shalt.err (!%p1005_p1)
}
  0x21   :  { %s1039_s0 = smov 64   ;;  %s1040_s3 = smov 4  }
  0x22   :  { %31 = dma.hbm_to_vmem [thread:$0]  %s1101_s1, 8192, %s1057_s12, [#allocation6], %s1039_s0, %s1039_s0, %s1040_s3  }
  0x23   :  { %1031 = dma.done.wait [#allocation3], 1024  }
  0x24   :  { %1032 = vsyncadd [#allocation3], 4294966272 }
  0x25   :  { %1033 = dma.done.wait [#allocation6], 8192  }
  0x26   :  { %1034 = vsyncadd [#allocation6], 4294959104  ;;  %v901_v0 = vld [vmem:[#allocation5 + $0x40] sm:$0xff]   ;;  %v905_v4 = vld [vmem:[#allocation5 + $0x48] sm:$0xff]   ;;  %s1041_s1 = smov [#allocation7]  }
  0x27   :  { %v902_v1 = vld [vmem:[#allocation5 + $0xc0] sm:$0xff]   ;;  %808 = vmatprep.subr.bf16.mxu0 %v901_v0  ;;  %v906_v5 = vld [vmem:[#allocation5 + $0xc8] sm:$0xff]   ;;  %v909_v8 = vld [vmem:[#allocation5 + $0x50] sm:$0xff]   ;;  %s734_s6 = sshll.u32 %s1041_s1, 4  ;;  %s735_s6 = int_to_ptr.vmem [resolvable:$true] %s734_s6 }
  0x28   :  { %v903_v2 = vld [vmem:[#allocation5] sm:$0xff]   ;;  %830 = vmatprep.subr.bf16.mxu1 %v902_v1  ;;  %v907_v6 = vld [vmem:[#allocation5 + $0x8] sm:$0xff]   ;;  %v910_v9 = vld [vmem:[#allocation5 + $0xd0] sm:$0xff]   ;;  %s1009_s7 = scalar_lea.vmem %s735_s6, 128  ;;  %p1014_p3 = scmp.lt.s32.totalorder %s735_s6, %s735_s6 }
  0x29   :  { %v904_v3 = vld [vmem:[#allocation5 + $0x80] sm:$0xff]   ;;  %809 = vmatpush3.bf16.msra.mxu0 %v903_v2  ;;  %v908_v7 = vld [vmem:[#allocation5 + $0x88] sm:$0xff]   ;;  %v911_v10 = vld [vmem:[#allocation5 + $0x10] sm:$0xff]   ;;  %p1010_p2 = scmp.ne.s32.totalorder %s735_s6, %s1009_s7  ;;  %p1015_p4 = scmp.lt.s32.totalorder %s1009_s7, %s1009_s7 }
  0x2a   :  { %831 = vmatpush3.bf16.msra.mxu1 %v904_v3  ;;  %810 = vmatprep.subr.bf16.mxu0 %v905_v4  ;;  %v912_v11 = vld [vmem:[#allocation5 + $0x90] sm:$0xff]   ;;  %v913_v12 = vld [vmem:[#allocation5 + $0x58] sm:$0xff]   ;;  %v917_v16 = vld [vmem:[#allocation5 + $0x60] sm:$0xff]  }
  0x2b   :  { %832 = vmatprep.subr.bf16.mxu1 %v906_v5  ;;  %v914_v13 = vld [vmem:[#allocation5 + $0xd8] sm:$0xff]   ;;  %v918_v17 = vld [vmem:[#allocation5 + $0xe0] sm:$0xff]   ;;  %v921_v20 = vld [vmem:[#allocation5 + $0x68] sm:$0xff]   ;;  %p1016_p5 = por %p1015_p4, %p1014_p3 }
  0x2c   :  { %v915_v14 = vld [vmem:[#allocation5 + $0x18] sm:$0xff]   ;;  %v919_v18 = vld [vmem:[#allocation5 + $0x20] sm:$0xff]   ;;  %v922_v21 = vld [vmem:[#allocation5 + $0xe8] sm:$0xff]  }
  0x2d   :  { %811 = vmatpush3.bf16.msra.mxu0 %v907_v6  ;;  %v916_v15 = vld [vmem:[#allocation5 + $0x98] sm:$0xff]   ;;  %v920_v19 = vld [vmem:[#allocation5 + $0xa0] sm:$0xff]   ;;  %v923_v22 = vld [vmem:[#allocation5 + $0x28] sm:$0xff]   ;;  %p1017_p6 = pnand %p1016_p5, %p1010_p2 }
  0x2e   :  { %833 = vmatpush3.bf16.msra.mxu1 %v908_v7  ;;  %812 = vmatprep.subr.bf16.mxu0 %v909_v8  ;;  %v924_v23 = vld [vmem:[#allocation5 + $0xa8] sm:$0xff]   ;;  %v925_v24 = vld [vmem:[#allocation5 + $0x70] sm:$0xff]   ;;  %v929_v28 = vld [vmem:[#allocation5 + $0x78] sm:$0xff]  }
  0x2f   :  { %834 = vmatprep.subr.bf16.mxu1 %v910_v9  ;;  %v926_v25 = vld [vmem:[#allocation5 + $0xf0] sm:$0xff]   ;;  %v930_v29 = vld [vmem:[#allocation5 + $0xf8] sm:$0xff]   ;;  %v40_v32 = vld [vmem:[#allocation2 + $0x8] sm:$0xff] }
  0x30   :  { %v927_v26 = vld [vmem:[#allocation5 + $0x30] sm:$0xff]   ;;  %v931_v30 = vld [vmem:[#allocation5 + $0x38] sm:$0xff]   ;;  %v39_v34 = vld [vmem:[#allocation2] sm:$0xff]  ;;  %v48_v35 = vpack.c.bf16 %v40_v32, %v40_v32 }
  0x31   :  { %813 = vmatpush3.bf16.msra.mxu0 %v911_v10  ;;  %v928_v27 = vld [vmem:[#allocation5 + $0xb0] sm:$0xff]   ;;  %v932_v31 = vld [vmem:[#allocation5 + $0xb8] sm:$0xff]   ;;  %v47_v37 = vpack.c.bf16 %v39_v34, %v39_v34  ;;  %v933_v40 = vld [vmem:[#allocation5 + $0x140] sm:$0xff]  }
  0x32   :  { %835 = vmatpush3.bf16.msra.mxu1 %v912_v11  ;;  %814 = vmatprep.subr.bf16.mxu0 %v913_v12  ;;  %v42_v33 = vld [vmem:[#allocation2 + $0x18] sm:$0xff]  ;;  %v41_v38 = vld [vmem:[#allocation2 + $0x10] sm:$0xff]  ;;  %v934_v41 = vld [vmem:[#allocation5 + $0x1c0] sm:$0xff]  }
  0x33   :  { %836 = vmatprep.subr.bf16.mxu1 %v914_v13  ;;  %v50_v36 = vpack.c.bf16 %v42_v33, %v42_v33  ;;  %v49_v39 = vpack.c.bf16 %v41_v38, %v41_v38  ;;  %599 = vmatprep.mubr.bf16.mxu0 %v48_v35  ;;  %v935_v42 = vld [vmem:[#allocation5 + $0x100] sm:$0xff]   ;;  %v937_v44 = vld [vmem:[#allocation5 + $0x148] sm:$0xff]   ;;  %v941_v48 = vld [vmem:[#allocation5 + $0x150] sm:$0xff]  }
  0x34   :  { %v936_v43 = vld [vmem:[#allocation5 + $0x180] sm:$0xff]   ;;  %v938_v45 = vld [vmem:[#allocation5 + $0x1c8] sm:$0xff]   ;;  %v942_v49 = vld [vmem:[#allocation5 + $0x1d0] sm:$0xff]  }
  0x35   :  { %815 = vmatpush3.bf16.msra.mxu0 %v915_v14  ;;  %639 = vmatprep.mubr.bf16.mxu1 %v50_v36  ;;  %v939_v46 = vld [vmem:[#allocation5 + $0x108] sm:$0xff]   ;;  %v943_v50 = vld [vmem:[#allocation5 + $0x110] sm:$0xff]   ;;  %v945_v52 = vld [vmem:[#allocation5 + $0x158] sm:$0xff]  }
  0x36   :  { %837 = vmatpush3.bf16.msra.mxu1 %v916_v15  ;;  %816 = vmatprep.subr.bf16.mxu0 %v917_v16  ;;  %v940_v47 = vld [vmem:[#allocation5 + $0x188] sm:$0xff]   ;;  %v944_v51 = vld [vmem:[#allocation5 + $0x190] sm:$0xff]   ;;  %v946_v53 = vld [vmem:[#allocation5 + $0x1d8] sm:$0xff]  }
  0x37   :  { %838 = vmatprep.subr.bf16.mxu1 %v918_v17  ;;  %v947_v54 = vld [vmem:[#allocation5 + $0x118] sm:$0xff]   ;;  %v949_v56 = vld [vmem:[#allocation5 + $0x160] sm:$0xff]   ;;  %v953_v60 = vld [vmem:[#allocation5 + $0x168] sm:$0xff]  }
  0x38   :  { %v948_v55 = vld [vmem:[#allocation5 + $0x198] sm:$0xff]   ;;  %v950_v57 = vld [vmem:[#allocation5 + $0x1e0] sm:$0xff]   ;;  %v954_v61 = vld [vmem:[#allocation5 + $0x1e8] sm:$0xff]  }
  0x39   :  { %817 = vmatpush3.bf16.msra.mxu0 %v919_v18  ;;  %v951_v58 = vld [vmem:[#allocation5 + $0x120] sm:$0xff]   ;;  %v955_v62 = vld [vmem:[#allocation5 + $0x128] sm:$0xff]   ;;  %v957_v0 = vld [vmem:[#allocation5 + $0x170] sm:$0xff]  }
  0x3a   :  { %839 = vmatpush3.bf16.msra.mxu1 %v920_v19  ;;  %818 = vmatprep.subr.bf16.mxu0 %v921_v20  ;;  %v952_v59 = vld [vmem:[#allocation5 + $0x1a0] sm:$0xff]   ;;  %v956_v63 = vld [vmem:[#allocation5 + $0x1a8] sm:$0xff]   ;;  %v958_v1 = vld [vmem:[#allocation5 + $0x1f0] sm:$0xff]  }
  0x3b   :  { %840 = vmatprep.subr.bf16.mxu1 %v922_v21  ;;  %v959_v2 = vld [vmem:[#allocation5 + $0x130] sm:$0xff]   ;;  %v961_v4 = vld [vmem:[#allocation5 + $0x178] sm:$0xff]   ;;  %v44_v8 = vld [vmem:[#allocation2 + $0x28] sm:$0xff] }
  0x3c   :  { %v960_v3 = vld [vmem:[#allocation5 + $0x1b0] sm:$0xff]   ;;  %v962_v5 = vld [vmem:[#allocation5 + $0x1f8] sm:$0xff]   ;;  %v52_v10 = vpack.c.bf16 %v44_v8, %v44_v8  ;;  %v43_v12 = vld [vmem:[#allocation2 + $0x20] sm:$0xff] }
  0x3d   :  { %819 = vmatpush3.bf16.msra.mxu0 %v923_v22  ;;  %v963_v6 = vld [vmem:[#allocation5 + $0x138] sm:$0xff]   ;;  %v45_v13 = vld [vmem:[#allocation2 + $0x30] sm:$0xff]  ;;  %v51_v14 = vpack.c.bf16 %v43_v12, %v43_v12 }
  0x3e   :  { %841 = vmatpush3.bf16.msra.mxu1 %v924_v23  ;;  %820 = vmatprep.subr.bf16.mxu0 %v925_v24  ;;  %v964_v7 = vld [vmem:[#allocation5 + $0x1b8] sm:$0xff]   ;;  %v53_v15 = vpack.c.bf16 %v45_v13, %v45_v13 }
  0x3f   :  { %842 = vmatprep.subr.bf16.mxu1 %v926_v25  ;;  %v46_v9 = vld [vmem:[#allocation2 + $0x38] sm:$0xff] }
  0x40   :  { %v54_v11 = vpack.c.bf16 %v46_v9, %v46_v9 }
  0x41   :  { %821 = vmatpush3.bf16.msra.mxu0 %v927_v26 }
  0x42   :  { %843 = vmatpush3.bf16.msra.mxu1 %v928_v27  ;;  %822 = vmatprep.subr.bf16.mxu0 %v929_v28 }
  0x43   :  { %844 = vmatprep.subr.bf16.mxu1 %v930_v29 }
  0x45   :  { %823 = vmatpush3.bf16.msra.mxu0 %v931_v30 }
  0x46   :  { %845 = vmatpush3.bf16.msra.mxu1 %v932_v31  ;;  %852 = vmatprep.subr.bf16.mxu0 %v933_v40 }
  0x47   :  { %874 = vmatprep.subr.bf16.mxu1 %v934_v41 }
  0x48   :  { %600 = vmatmul.mubr.bf16.vlgmr.msra.gmra.mrb[0].mxu0 %v47_v37 }
  0x49   :  { %640 = vmatmul.mubr.bf16.vlgmr.msra.gmra.mrb[0].mxu1 %v49_v39  ;;  %853 = vmatpush3.bf16.msra.mxu0 %v935_v42 }
  0x4a   :  { %875 = vmatpush3.bf16.msra.mxu1 %v936_v43  ;;  %854 = vmatprep.subr.bf16.mxu0 %v937_v44 }
  0x4b   :  { %876 = vmatprep.subr.bf16.mxu1 %v938_v45  ;;  %679 = vmatprep.mubr.bf16.mxu0 %v52_v10 }
  0x4c   :  { %719 = vmatprep.mubr.bf16.mxu1 %v54_v11 }
  0x4d   :  { %855 = vmatpush3.bf16.msra.mxu0 %v939_v46 }
  0x4e   :  { %877 = vmatpush3.bf16.msra.mxu1 %v940_v47  ;;  %856 = vmatprep.subr.bf16.mxu0 %v941_v48 }
  0x4f   :  { %878 = vmatprep.subr.bf16.mxu1 %v942_v49 }
  0x51   :  { %857 = vmatpush3.bf16.msra.mxu0 %v943_v50 }
  0x52   :  { %879 = vmatpush3.bf16.msra.mxu1 %v944_v51  ;;  %858 = vmatprep.subr.bf16.mxu0 %v945_v52 }
  0x53   :  { %880 = vmatprep.subr.bf16.mxu1 %v946_v53 }
  0x55   :  { %859 = vmatpush3.bf16.msra.mxu0 %v947_v54 }
  0x56   :  { %881 = vmatpush3.bf16.msra.mxu1 %v948_v55  ;;  %860 = vmatprep.subr.bf16.mxu0 %v949_v56 }
  0x57   :  { %882 = vmatprep.subr.bf16.mxu1 %v950_v57 }
  0x59   :  { %861 = vmatpush3.bf16.msra.mxu0 %v951_v58 }
  0x5a   :  { %883 = vmatpush3.bf16.msra.mxu1 %v952_v59  ;;  %862 = vmatprep.subr.bf16.mxu0 %v953_v60 }
  0x5b   :  { %884 = vmatprep.subr.bf16.mxu1 %v954_v61 }
  0x5d   :  { %863 = vmatpush3.bf16.msra.mxu0 %v955_v62 }
  0x5e   :  { %885 = vmatpush3.bf16.msra.mxu1 %v956_v63  ;;  %864 = vmatprep.subr.bf16.mxu0 %v957_v0 }
  0x5f   :  { %886 = vmatprep.subr.bf16.mxu1 %v958_v1 }
  0x61   :  { %865 = vmatpush3.bf16.msra.mxu0 %v959_v2 }
  0x62   :  { %887 = vmatpush3.bf16.msra.mxu1 %v960_v3  ;;  %866 = vmatprep.subr.bf16.mxu0 %v961_v4 }
  0x63   :  { %888 = vmatprep.subr.bf16.mxu1 %v962_v5 }
  0x65   :  { %867 = vmatpush3.bf16.msra.mxu0 %v963_v6 }
  0x66   :  { %889 = vmatpush3.bf16.msra.mxu1 %v964_v7 }
  0x68   :  { %680 = vmatmul.mubr.bf16.vlgmr.msra.gmra.mrb[4].mxu0 %v51_v14 }
  0x69   :  { %720 = vmatmul.mubr.bf16.vlgmr.msra.gmra.mrb[4].mxu1 %v53_v15 }
 0x11b   :  { %v824_v16 = vpop.f32.mrb[0].mxu0 }
 0x11c   :  { %v846_v17 = vpop.f32.mrb[0].mxu1  ;;  %v825_v18 = vpop.f32.mrb[1].mxu0 }
 0x11d   :  { %v847_v19 = vpop.f32.mrb[1].mxu1  ;;  %v826_v20 = vadd.f32 %v825_v18, %v824_v16  ;;  %v827_v22 = vpop.f32.mrb[2].mxu0 }
 0x11e   :  { %v848_v21 = vadd.f32 %v847_v19, %v846_v17  ;;  %v849_v23 = vpop.f32.mrb[2].mxu1  ;;  %v828_v24 = vpop.f32.mrb[3].mxu0 }
 0x11f   :  { %v850_v25 = vpop.f32.mrb[3].mxu1 }
 0x120   :  { %v642_v26 = vadd.f32 %v848_v21, %v826_v20 }
 0x13b   :  { %v868_v27 = vpop.f32.mrb[4].mxu0 }
 0x13c   :  { %v890_v28 = vpop.f32.mrb[4].mxu1  ;;  %v869_v29 = vpop.f32.mrb[5].mxu0 }
 0x13d   :  { %v870_v30 = vadd.f32 %v869_v29, %v868_v27  ;;  %v891_v31 = vpop.f32.mrb[5].mxu1  ;;  %v871_v32 = vpop.f32.mrb[6].mxu0 }
 0x13e   :  { %v892_v33 = vadd.f32 %v891_v31, %v890_v28  ;;  %v893_v34 = vpop.f32.mrb[6].mxu1  ;;  %v872_v35 = vpop.f32.mrb[7].mxu0 }
 0x13f   :  { %v682_v36 = vadd.f32 %v870_v30, %v642_v26  ;;  %v894_v37 = vpop.f32.mrb[7].mxu1 }
 0x141   :  { %v722_v38 = vadd.f32 %v892_v33, %v682_v36 }
 0x143   :  { %727 = vst [vmem:[#allocation7] sm:$0xff] %v722_v38 }
 0x144   :  { %1020 = shalt.err (!%p1017_p6)
}
 0x145   :  { %s1021_s10 = scalar_lea.hbm %s1102_s2, 128 }
 0x146   :  { %p1022_p7 = scmp.ne.s32.totalorder %s1102_s2, %s1021_s10  ;;  %p1025_p8 = scmp.lt.u32.totalorder %s1021_s10, %s1102_s2 }
 0x148   :  { %p1027_p9 = pnand %p1025_p8, %p1022_p7 }
 0x14a   :  { %1030 = shalt.err (!%p1027_p9)
}
 0x14b   :  { %737 = dma.vmem_to_hbm [thread:$0]  %s735_s6, 128, %s1102_s2, [#allocation4]  }
 0x14c   :  { %1035 = dma.done.wait [#allocation4], 128  }
 0x14d   :  { %1036 = vsyncadd [#allocation4], 4294967168 }
 0x14e   :  { %741 = vsyncpa [#allocation3], 1 }
 0x14f   :  { %742 = vsyncpa [#allocation6], 1 }
 0x150   :  { %743 = vsyncpa [#allocation4], 1 }

</bundles_post_ra>
